<compile_context>
chip_gen: v5e
topology: v5e:2x2
jax: 0.10.0
libtpu: 0.0.40
codegen_flags: <defaults>
</compile_context>

<pallas_src>
import jax
import jax.numpy as jnp
from jax.experimental import pallas as pl
from jax.experimental.pallas import tpu as pltpu


def mlp_kernel(x_ref, w1_ref, b1_ref, w2_ref, b2_ref, w3_ref, b3_ref, o_ref):
    # LayerX1: Linear(44 -> 24) + ReLU   (MXU, f32 accumulation)
    h1 = jnp.dot(x_ref[...], w1_ref[...], preferred_element_type=jnp.float32)
    h1 = jnp.maximum(h1 + b1_ref[...], 0.0)

    # LayerX2: Linear(24 -> 10) + ReLU
    h1 = h1.astype(w2_ref.dtype)          # keep the MXU in the streaming dtype (bf16 path)
    h2 = jnp.dot(h1, w2_ref[...], preferred_element_type=jnp.float32)
    h2 = jnp.maximum(h2 + b2_ref[...], 0.0)

    # LayerX3: Linear(10 -> 1) + Sigmoid, done on the VPU/XLU (skip the N=1 MXU matmul).
    z = jnp.sum(h2 * w3_ref[...], axis=-1, keepdims=True) + b3_ref[...]   # (TB, 1) f32
    # Lane-dense store: relayout the (TB, 1) column into a (1, TB) row so the
    # writeback uses full-lane (unmasked) stores.
    o_ref[...] = jax.nn.sigmoid(z).reshape(o_ref.shape).astype(o_ref.dtype)


def my_mode_forward(x, params, *, tile_b=4096, compute_dtype=jnp.bfloat16):
    """Forward pass of MyMode. Returns (B, 1) float32."""
    w1, b1, w2, b2, w3, b3 = params
    B, F = x.shape

    # Batch tiling: single tile if B fits, otherwise a multiple-of-128 tile so both
    # the x block (sublane dim) and the lane-dense output block are layout-legal.
    if B <= tile_b:
        TB, Bp = B, B
    else:
        TB = max(128, (tile_b // 128) * 128)
        Bp = pl.cdiv(B, TB) * TB
    num_tiles = Bp // TB

    xp = x if Bp == B else jnp.pad(x, ((0, Bp - B), (0, 0)))
    # Stream the big operand (and the MXU weights) in the compute dtype; f32 accumulation.
    xc = xp.astype(compute_dtype)
    w1c = w1.astype(compute_dtype)
    w2c = w2.astype(compute_dtype)
    w3_row = w3.reshape(1, -1).astype(jnp.float32)    # (1, 10) row for the VPU layer
    b1f = b1.astype(jnp.float32)
    b2f = b2.astype(jnp.float32)
    b3f = b3.astype(jnp.float32)

    const = lambda a: pl.BlockSpec(a.shape, lambda i: (0,) * a.ndim)  # VMEM-resident

    out_row = pl.pallas_call(
        mlp_kernel,
        out_shape=jax.ShapeDtypeStruct((1, Bp), jnp.float32),
        grid=(num_tiles,),
        in_specs=[
            pl.BlockSpec((TB, F), lambda i: (i, 0)),   # x: streamed + double-buffered
            const(w1c), const(b1f),
            const(w2c), const(b2f),
            const(w3_row), const(b3f),
        ],
        out_specs=pl.BlockSpec((1, TB), lambda i: (0, i)),   # lane-dense output row
        compiler_params=pltpu.CompilerParams(
            dimension_semantics=("parallel",),   # batch tiles shard across v7x's 2 TCs
        ),
    )(xc, w1c, b1f, w2c, b2f, w3_row, b3f)

    return out_row.reshape(Bp, 1)[:B]


def init_params(key):
    """Deterministic init mirroring nn.Linear default: U(-1/sqrt(fan_in), 1/sqrt(fan_in))."""
    dims = [(44, 24), (24, 10), (10, 1)]
    params = []
    for (fin, fout) in dims:
        key, kw, kb = jax.random.split(key, 3)
        bound = 1.0 / jnp.sqrt(float(fin))
        w = jax.random.uniform(kw, (fin, fout), jnp.float32, -bound, bound)
        b = jax.random.uniform(kb, (1, fout), jnp.float32, -bound, bound)
        params += [w, b]
    return tuple(params)


def reference_forward(x, params):
    w1, b1, w2, b2, w3, b3 = params
    h1 = jnp.maximum(x @ w1 + b1, 0.0)
    h2 = jnp.maximum(h1 @ w2 + b2, 0.0)
    return jax.nn.sigmoid(h2 @ w3 + b3)


if __name__ == "__main__":
    key = jax.random.PRNGKey(0)
    kx, kp = jax.random.split(key)

    B = 200
    x = jax.random.normal(kx, (B, 44), jnp.float32)
    params = init_params(kp)

    ref = reference_forward(x, params)

    # f32 path, small tile -> exercises the multi-tile grid + batch padding (tight check).
    out_f32 = jax.block_until_ready(
        my_mode_forward(x, params, tile_b=128, compute_dtype=jnp.float32))
    assert out_f32.shape == (B, 1)
    assert jnp.allclose(out_f32, ref, atol=1e-5, rtol=1e-5)

    # Default path: bf16 streaming, single tile for this small B (looser check).
    out_bf16 = jax.block_until_ready(my_mode_forward(x, params))
    assert out_bf16.shape == (B, 1)
    assert jnp.allclose(out_bf16, ref, atol=3e-2, rtol=0)

    print("KERNEL_OK")
</pallas_src>

<mosaic_0001>
module attributes {stable_mosaic.version = 11 : i64} {
  func.func @mlp_kernel(%arg0: i32, %arg1: memref<128x44xf32, #tpu.memory_space<vmem>>, %arg2: memref<44x24xf32, #tpu.memory_space<vmem>>, %arg3: memref<1x24xf32, #tpu.memory_space<vmem>>, %arg4: memref<24x10xf32, #tpu.memory_space<vmem>>, %arg5: memref<1x10xf32, #tpu.memory_space<vmem>>, %arg6: memref<1x10xf32, #tpu.memory_space<vmem>>, %arg7: memref<1x1xf32, #tpu.memory_space<vmem>>, %arg8: memref<1x128xf32, #tpu.memory_space<vmem>>) attributes {dimension_semantics = [#tpu.dimension_semantics<parallel>], iteration_bounds = array<i64: 2>, scalar_prefetch = 0 : i64, scratch_operands = 0 : i64, tpu.core_type = #tpu.core_type<tc>, window_params = [{transform_indices = @transform_0, window_bounds = array<i64: 128, 44>}, {pipeline_mode = #tpu.pipeline_mode<synchronous>, transform_indices = @transform_1, window_bounds = array<i64: 44, 24>}, {pipeline_mode = #tpu.pipeline_mode<synchronous>, transform_indices = @transform_2, window_bounds = array<i64: 1, 24>}, {pipeline_mode = #tpu.pipeline_mode<synchronous>, transform_indices = @transform_3, window_bounds = array<i64: 24, 10>}, {pipeline_mode = #tpu.pipeline_mode<synchronous>, transform_indices = @transform_4, window_bounds = array<i64: 1, 10>}, {pipeline_mode = #tpu.pipeline_mode<synchronous>, transform_indices = @transform_5, window_bounds = array<i64: 1, 10>}, {pipeline_mode = #tpu.pipeline_mode<synchronous>, transform_indices = @transform_6, window_bounds = array<i64: 1, 1>}, {transform_indices = @transform_7, window_bounds = array<i64: 1, 128>}]} {
    %c0 = arith.constant 0 : index
    %c0_0 = arith.constant 0 : index
    %0 = vector.load %arg1[%c0, %c0_0] : memref<128x44xf32, #tpu.memory_space<vmem>>, vector<128x44xf32>
    %c0_1 = arith.constant 0 : index
    %c0_2 = arith.constant 0 : index
    %1 = vector.load %arg2[%c0_1, %c0_2] : memref<44x24xf32, #tpu.memory_space<vmem>>, vector<44x24xf32>
    %cst = arith.constant dense<0.000000e+00> : vector<128x24xf32>
    %2 = tpu.matmul %0, %1, %cst {dimension_numbers = #tpu.dot_dimension_numbers<[1], [0], [0], [1], [0, 0, 1, 1], [], []>} : vector<128x44xf32>, vector<44x24xf32>, vector<128x24xf32> -> vector<128x24xf32>
    %c0_3 = arith.constant 0 : index
    %c0_4 = arith.constant 0 : index
    %3 = vector.load %arg3[%c0_3, %c0_4] : memref<1x24xf32, #tpu.memory_space<vmem>>, vector<1x24xf32>
    %4 = vector.broadcast %3 : vector<1x24xf32> to vector<128x24xf32>
    %5 = arith.addf %2, %4 : vector<128x24xf32>
    %cst_5 = arith.constant 0.000000e+00 : f32
    %6 = vector.broadcast %cst_5 : f32 to vector<128x24xf32>
    %7 = arith.maximumf %5, %6 : vector<128x24xf32>
    %c0_6 = arith.constant 0 : index
    %c0_7 = arith.constant 0 : index
    %8 = vector.load %arg4[%c0_6, %c0_7] : memref<24x10xf32, #tpu.memory_space<vmem>>, vector<24x10xf32>
    %cst_8 = arith.constant dense<0.000000e+00> : vector<128x10xf32>
    %9 = tpu.matmul %7, %8, %cst_8 {dimension_numbers = #tpu.dot_dimension_numbers<[1], [0], [0], [1], [0, 0, 1, 1], [], []>} : vector<128x24xf32>, vector<24x10xf32>, vector<128x10xf32> -> vector<128x10xf32>
    %c0_9 = arith.constant 0 : index
    %c0_10 = arith.constant 0 : index
    %10 = vector.load %arg5[%c0_9, %c0_10] : memref<1x10xf32, #tpu.memory_space<vmem>>, vector<1x10xf32>
    %11 = vector.broadcast %10 : vector<1x10xf32> to vector<128x10xf32>
    %12 = arith.addf %9, %11 : vector<128x10xf32>
    %cst_11 = arith.constant 0.000000e+00 : f32
    %13 = vector.broadcast %cst_11 : f32 to vector<128x10xf32>
    %14 = arith.maximumf %12, %13 : vector<128x10xf32>
    %c0_12 = arith.constant 0 : index
    %c0_13 = arith.constant 0 : index
    %15 = vector.load %arg6[%c0_12, %c0_13] : memref<1x10xf32, #tpu.memory_space<vmem>>, vector<1x10xf32>
    %16 = vector.broadcast %15 : vector<1x10xf32> to vector<128x10xf32>
    %17 = arith.mulf %14, %16 : vector<128x10xf32>
    %cst_14 = arith.constant dense<0.000000e+00> : vector<128xf32>
    %18 = vector.multi_reduction <add>, %17, %cst_14 [1] : vector<128x10xf32> to vector<128xf32>
    %19 = vector.shape_cast %18 : vector<128xf32> to vector<128x1xf32>
    %c0_15 = arith.constant 0 : index
    %c0_16 = arith.constant 0 : index
    %20 = vector.load %arg7[%c0_15, %c0_16] : memref<1x1xf32, #tpu.memory_space<vmem>>, vector<1x1xf32>
    %21 = vector.broadcast %20 : vector<1x1xf32> to vector<128x1xf32>
    %22 = arith.addf %19, %21 : vector<128x1xf32>
    %23 = arith.negf %22 : vector<128x1xf32>
    %24 = math.exp %23 : vector<128x1xf32>
    %cst_17 = arith.constant 1.000000e+00 : f32
    %25 = vector.broadcast %cst_17 : f32 to vector<128x1xf32>
    %26 = arith.addf %25, %24 : vector<128x1xf32>
    %27 = arith.divf %25, %26 : vector<128x1xf32>
    %28 = vector.shape_cast %27 : vector<128x1xf32> to vector<1x128xf32>
    %c0_18 = arith.constant 0 : index
    %c0_19 = arith.constant 0 : index
    %29 = vector.load %arg8[%c0_18, %c0_19] : memref<1x128xf32, #tpu.memory_space<vmem>>, vector<1x128xf32>
    tpu.vector_store %arg8[%c0_18, %c0_19], %28 {strides = array<i32>} : memref<1x128xf32, #tpu.memory_space<vmem>>, vector<1x128xf32>,
    return
  }
  func.func @transform_0(%arg0: i32) -> (i32, i32) {
    %c0_i32 = arith.constant 0 : i32
    %c0_i32_0 = arith.constant 0 : i32
    return %arg0, %c0_i32 : i32, i32
  }
  func.func @transform_1(%arg0: i32) -> (i32, i32) {
    %c0_i32 = arith.constant 0 : i32
    %c0_i32_0 = arith.constant 0 : i32
    %c0_i32_1 = arith.constant 0 : i32
    return %c0_i32, %c0_i32_0 : i32, i32
  }
  func.func @transform_2(%arg0: i32) -> (i32, i32) {
    %c0_i32 = arith.constant 0 : i32
    %c0_i32_0 = arith.constant 0 : i32
    %c0_i32_1 = arith.constant 0 : i32
    return %c0_i32, %c0_i32_0 : i32, i32
  }
  func.func @transform_3(%arg0: i32) -> (i32, i32) {
    %c0_i32 = arith.constant 0 : i32
    %c0_i32_0 = arith.constant 0 : i32
    %c0_i32_1 = arith.constant 0 : i32
    return %c0_i32, %c0_i32_0 : i32, i32
  }
  func.func @transform_4(%arg0: i32) -> (i32, i32) {
    %c0_i32 = arith.constant 0 : i32
    %c0_i32_0 = arith.constant 0 : i32
    %c0_i32_1 = arith.constant 0 : i32
    return %c0_i32, %c0_i32_0 : i32, i32
  }
  func.func @transform_5(%arg0: i32) -> (i32, i32) {
    %c0_i32 = arith.constant 0 : i32
    %c0_i32_0 = arith.constant 0 : i32
    %c0_i32_1 = arith.constant 0 : i32
    return %c0_i32, %c0_i32_0 : i32, i32
  }
  func.func @transform_6(%arg0: i32) -> (i32, i32) {
    %c0_i32 = arith.constant 0 : i32
    %c0_i32_0 = arith.constant 0 : i32
    %c0_i32_1 = arith.constant 0 : i32
    return %c0_i32, %c0_i32_0 : i32, i32
  }
  func.func @transform_7(%arg0: i32) -> (i32, i32) {
    %c0_i32 = arith.constant 0 : i32
    %c0_i32_0 = arith.constant 0 : i32
    return %c0_i32, %arg0 : i32, i32
  }
}

</mosaic_0001>

<bundles_post_ra>
// kernel: tpu_custom_call.1
= control target key start
LH: loop header
LB: loop body
LE: loop exit
PB: predicated region body
PF: predicated region fallthrough
CT: control target
= control target key end

     0   :  { %s1835_s0 = inlined_call_operand.vmem [shape: f32[256,44], index: 0, kind: input, shape index: {}]   ;;  %s1836_s1 = inlined_call_operand.vmem [shape: f32[44,24], index: 1, kind: input, shape index: {}]   ;;  %s1837_s2 = inlined_call_operand.vmem [shape: f32[1,24], index: 2, kind: input, shape index: {}]   ;;  %s1838_s3 = inlined_call_operand.vmem [shape: f32[24,10], index: 3, kind: input, shape index: {}]   ;;  %s1839_s4 = inlined_call_operand.vmem [shape: f32[1,10], index: 4, kind: input, shape index: {}]   ;;  %s1840_s5 = inlined_call_operand.vmem [shape: f32[1,10], index: 5, kind: input, shape index: {}]   ;;  %s1841_s6 = inlined_call_operand.<no memory space> [shape: f32[1,1], index: 6, kind: input, shape index: {}]   ;;  %s1842_s7 = inlined_call_operand.hbm [shape: f32[1,256], index: 7, kind: output, shape index: {}]  }
   0x1   :  { %v12_v0 = vstv %s1841_s6 }
   0x2   :  { %13 = vst [vmem:[#allocation2] sm:$0x1] %v12_v0 }
   0x3   :  { %14 = vsyncpa [#allocation4], 0 }
   0x4   :  { %16 = vsyncpa [#allocation4 + $0x1], 0  ;;  %s1452_s26 = smov 0   ;;  %s1454_s27 = smov 0  }
   0x5   :  { %s1456_s28 = smov 0   ;;  %s1458_s29 = smov 0  }
   0x6 LB: > { %s1473_s6 = sadd.s32 4294967295, %s1406_s29   ;;  %s1167_s30 = sadd.s32 4294967294, %s1406_s29   ;;  %s1406_s29 = sphi %s1458_s29, %s1854_s29   ;;  %s1402_s28 = sphi %s1456_s28, %s1853_s28   ;;  %s1398_s27 = sphi %s1454_s27, %s1852_s27   ;;  %s1394_s26 = sphi %s1452_s26, %s1851_s26  }
   0x7   : > { %s1477_s8 = sadd.s32 1, %s1406_s29   ;;  %s181_s9 = sadd.s32 1, %s1402_s28 }
   0x8   : > { %s178_s10 = ssub.s32 %s1406_s29, %s1477_s8  ;;  %p191_p0 = scmp.ne.s32.totalorder %s1402_s28, %s1398_s27 }
   0x9   : > { %p179_p1 = scmp.eq.s32.totalorder %s178_s10, 0  ;;  %p192_p2 = scmp.eq.s32.totalorder %s1473_s6, 1 }
   0xa   : > { %p197_p3 = scmp.ne.s32.totalorder %s1398_s27, %s1394_s26  ;;  %p198_p4 = scmp.eq.s32.totalorder %s1167_s30, 1 }
   0xb   : > { %s1488_s11 = scalar_select %p179_p1, %s1402_s28, %s181_s9  }
   0xc   : > { %p1490_p5 = por %p192_p2, %p191_p0  ;;  %p1494_p6 = por %p198_p4, %p197_p3 }
   0xd   : > { %p1170_p7 = scmp.ge.s32.totalorder %s1406_s29, 1  ;;  %p243_p8 = scmp.lt.s32.totalorder %s1406_s29, 3 }
   0xf   : > { %p244_p9 = pnand %p1170_p7, %p243_p8 }
  0x10   : > { %s1171_s18 = sshll.u32 (!%p244_p9), %s1473_s6, 4  ;;  %s1108_s16 = scalar_lea.hbm (!%p244_p9), %s1842_s7, %s1473_s6 }
  0x11   : > { %247 = sbr.rel (%p244_p9) target bundleno = 641 (0x281), region = 48  ;;  %p275_p10 = scmp.lt.s32.totalorder (!%p244_p9), %s1171_s18, 31 }
  0x12   : > { %s1112_s19 = sshll.u32 (!%p244_p9), %s1108_s16, 4  ;;  %s1364_s24 = scalar_lea.hbm (!%p244_p9), %s1842_s7, 2  ;;  %s1113_s19 = int_to_ptr.hbm [resolvable:$true] %s1112_s19 }
  0x13   : > { %s1358_s20 = sshra.s32 (!%p244_p9), %s1113_s19, 4  ;;  %s1359_s20 = int_to_ptr.hbm [resolvable:$true] %s1358_s20 }
  0x14   : > { %s1360_s21 = scalar_lea.hbm (!%p244_p9), %s1359_s20, 1  ;;  %p1365_p0 = scmp.lt.s32.totalorder (!%p244_p9), %s1359_s20, %s1842_s7 }
  0x15   : > { %p1361_p11 = scmp.ne.s32.totalorder (!%p244_p9), %s1359_s20, %s1360_s21  ;;  %p1366_p1 = scmp.lt.s32.totalorder (!%p244_p9), %s1364_s24, %s1360_s21 }
  0x16   : > { %v301_v1 = vld [vmem:[%s1836_s1 + $0x28] sm:$0xf]  ;;  %vm355_vm0 = vcmask 1043456   ;;  %v300_v2 = vld [vmem:[%s1836_s1 + $0x20] sm:$0xff]  ;;  %v299_v3 = vld [vmem:[%s1836_s1 + $0x18] sm:$0xff]  ;;  %s1856_s18 = smov (!%p275_p10, %s1171_s18), 31 }
  0x17   : > { %1173 = vmatpush.msk.msra.mxu0 %vm355_vm0, %v301_v1  ;;  %1224 = vmatpush.msk.msra.mxu2 %vm355_vm0, %v301_v1  ;;  %v298_v4 = vld [vmem:[%s1836_s1 + $0x10] sm:$0xff]  ;;  %s1172_s23 = sshll.u32 %s1856_s18, 3  ;;  %v297_v5 = vld [vmem:[%s1836_s1 + $0x8] sm:$0xff]  ;;  %v296_v6 = vld [vmem:[%s1836_s1] sm:$0xff]  ;;  %vm306_vm1 = vcmask 359424   ;;  %vm447_vm2 = vcmask 195584   ;;  %p1362_p12 = pnand %p1361_p11, %p1490_p5 }
  0x18   : > { %s1519_s10 = scalar_lea.vmem %s1835_s0, %s1172_s23  ;;  %v442_v23 = vld [vmem:[%s1838_s3 + $0x10] sm:$0xff]  ;;  %v441_v24 = vld [vmem:[%s1838_s3 + $0x8] sm:$0xff]  ;;  %v440_v25 = vld [vmem:[%s1838_s3] sm:$0xff]  ;;  %vm597_vm3 = vcmask 80896   ;;  %p1367_p2 = por %p1366_p1, %p1365_p0 }
  0x19   : > { %370 = vmatpush.msra.mxu0 %v300_v2  ;;  %1225 = vmatpush.msra.mxu2 %v300_v2  ;;  %v280_v7 = vld [vmem:[%s1519_s10] sm:$0xff]  ;;  %v281_v9 = vld [vmem:[%s1519_s10 + $0x8] sm:$0xff]  ;;  %v282_v11 = vld [vmem:[%s1519_s10 + $0x10] sm:$0xff]  ;;  %p1363_p13 = pneg %p1362_p12 }
  0x1a   : > { %v288_v8 = vld [vmem:[%s1519_s10 + $0x40] sm:$0xff]  ;;  %v289_v10 = vld [vmem:[%s1519_s10 + $0x48] sm:$0xff]  ;;  %v290_v12 = vld [vmem:[%s1519_s10 + $0x50] sm:$0xff]  ;;  %509 = vmatpush.msra.mxu1 %v442_v23  ;;  %1230 = vmatpush.msra.mxu3 %v442_v23 }
  0x1b   : > { %371 = vmatpush.msra.mxu0 %v299_v3  ;;  %1226 = vmatpush.msra.mxu2 %v299_v3  ;;  %v283_v13 = vld [vmem:[%s1519_s10 + $0x18] sm:$0xff]  ;;  %v284_v15 = vld [vmem:[%s1519_s10 + $0x20] sm:$0xff]  ;;  %v285_v17 = vld [vmem:[%s1519_s10 + $0x28] sm:$0xff]  ;;  %p1368_p3 = pnand %p1367_p2, %p1363_p13 }
  0x1c   : > { %v291_v14 = vld [vmem:[%s1519_s10 + $0x58] sm:$0xff]  ;;  %v292_v16 = vld [vmem:[%s1519_s10 + $0x60] sm:$0xff]  ;;  %v293_v18 = vld [vmem:[%s1519_s10 + $0x68] sm:$0xff]  ;;  %510 = vmatpush.msra.mxu1 %v441_v24  ;;  %1231 = vmatpush.msra.mxu3 %v441_v24 }
  0x1d   : > { %372 = vmatpush.msra.mxu0 %v298_v4  ;;  %1227 = vmatpush.msra.mxu2 %v298_v4  ;;  %v286_v19 = vld [vmem:[%s1519_s10 + $0x30] sm:$0xff]  ;;  %v287_v21 = vld [vmem:[%s1519_s10 + $0x38] sm:$0xff]  ;;  %v1276_v26 = vld [vmem:[%s1837_s2] ss:$0 sm:$0xff] }
  0x1e   : > { %v294_v20 = vld [vmem:[%s1519_s10 + $0x70] sm:$0xff]  ;;  %v295_v22 = vld [vmem:[%s1519_s10 + $0x78] sm:$0xff]  ;;  %511 = vmatpush.msra.mxu1 %v440_v25  ;;  %1232 = vmatpush.msra.mxu3 %v440_v25  ;;  %s272_s10 = sand.u32 1, %s1398_s27  }
  0x1f   : > { %373 = vmatpush.msra.mxu0 %v297_v5  ;;  %1228 = vmatpush.msra.mxu2 %v297_v5  ;;  %s273_s17 = scalar_lea.vmem [#allocation3], %s272_s10  ;;  %s1100_s6 = scalar_lea.sflag [#allocation4], %s272_s10 }
  0x20   : > { %s1110_s18 = sshll.u32 %s273_s17, 4  ;;  %s1111_s18 = int_to_ptr.vmem [resolvable:$true] %s1110_s18 }
  0x21   : > { %374 = vmatpush.msra.mxu0 %v296_v6  ;;  %1229 = vmatpush.msra.mxu2 %v296_v6 }
  0x22   : > { %1174 = vmatmul.msk.f32.vlgmr.msra.gmra.mxu0 %vm306_vm1, %v280_v7  ;;  %1182 = vmatmul.msk.f32.vlgmr.msra.gmra.mxu2 %vm306_vm1, %v288_v8 }
  0x2a   : > { %1175 = vmatmul.msk.f32.gmra.mxu0 %vm306_vm1, %v281_v9  ;;  %1183 = vmatmul.msk.f32.gmra.mxu2 %vm306_vm1, %v289_v10 }
  0x32   : > { %1176 = vmatmul.msk.f32.gmra.mxu0 %vm306_vm1, %v282_v11  ;;  %1184 = vmatmul.msk.f32.gmra.mxu2 %vm306_vm1, %v290_v12  ;;  %v1587_v11 = vld [vmem:[%s1839_s4] ss:$0 sm:$0xff] }
  0x3a   : > { %1177 = vmatmul.msk.f32.gmra.mxu0 %vm306_vm1, %v283_v13  ;;  %1185 = vmatmul.msk.f32.gmra.mxu2 %vm306_vm1, %v291_v14  ;;  %v1593_v14 = vld [vmem:[%s1840_s5] ss:$0 sm:$0xff] }
  0x42   : > { %1178 = vmatmul.msk.f32.gmra.mxu0 %vm306_vm1, %v284_v15  ;;  %1186 = vmatmul.msk.f32.gmra.mxu2 %vm306_vm1, %v292_v16 }
  0x4a   : > { %1179 = vmatmul.msk.f32.gmra.mxu0 %vm306_vm1, %v285_v17  ;;  %1187 = vmatmul.msk.f32.gmra.mxu2 %vm306_vm1, %v293_v18 }
  0x52   : > { %1180 = vmatmul.msk.f32.gmra.mxu0 %vm306_vm1, %v286_v19  ;;  %1188 = vmatmul.msk.f32.gmra.mxu2 %vm306_vm1, %v294_v20 }
  0x5a   : > { %1181 = vmatmul.msk.f32.gmra.mxu0 %vm306_vm1, %v287_v21  ;;  %1189 = vmatmul.msk.f32.gmra.mxu2 %vm306_vm1, %v295_v22 }
  0x9f   : > { %v376_v27 = vpop.f32.mrf.mxu0 }
  0xa0   : > { %v377_v28 = vadd.f32 %v1276_v26, %v376_v27 }
  0xa2   : > { %v424_v29 = vmax.f32 %v377_v28, 0.0 }
  0xa4   : > { %1190 = vmatmul.msk.f32.vlgmr.msra.gmra.mxu1 %vm447_vm2, %v424_v29 }
  0xa5   : > { %v400_v30 = vpop.f32.mrf.mxu2 }
  0xa6   : > { %v401_v7 = vadd.f32 %v1276_v26, %v400_v30 }
  0xa7   : > { %v379_v31 = vpop.f32.mrf.mxu0 }
  0xa8   : > { %v380_v32 = vadd.f32 %v1276_v26, %v379_v31  ;;  %v432_v10 = vmax.f32 %v401_v7, 0.0 }
  0xaa   : > { %v425_v33 = vmax.f32 %v380_v32, 0.0 }
  0xac   : > { %1191 = vmatmul.msk.f32.gmra.mxu1 %vm447_vm2, %v425_v33 }
  0xad   : > { %v403_v34 = vpop.f32.mrf.mxu2 }
  0xae   : > { %v404_v35 = vadd.f32 %v1276_v26, %v403_v34 }
  0xaf   : > { %v382_v36 = vpop.f32.mrf.mxu0 }
  0xb0   : > { %v433_v37 = vmax.f32 %v404_v35, 0.0  ;;  %v383_v38 = vadd.f32 %v1276_v26, %v382_v36 }
  0xb2   : > { %v426_v39 = vmax.f32 %v383_v38, 0.0  ;;  %1199 = vmatmul.msk.f32.vlgmr.msra.gmra.mxu3 %vm447_vm2, %v433_v37 }
  0xb4   : > { %1192 = vmatmul.msk.f32.gmra.mxu1 %vm447_vm2, %v426_v39 }
  0xb5   : > { %v406_v40 = vpop.f32.mrf.mxu2 }
  0xb6   : > { %v407_v41 = vadd.f32 %v1276_v26, %v406_v40 }
  0xb7   : > { %v385_v42 = vpop.f32.mrf.mxu0 }
  0xb8   : > { %v434_v43 = vmax.f32 %v407_v41, 0.0  ;;  %v386_v44 = vadd.f32 %v1276_v26, %v385_v42 }
  0xba   : > { %v427_v45 = vmax.f32 %v386_v44, 0.0  ;;  %1200 = vmatmul.msk.f32.gmra.mxu3 %vm447_vm2, %v434_v43 }
  0xbc   : > { %1193 = vmatmul.msk.f32.gmra.mxu1 %vm447_vm2, %v427_v45 }
  0xbd   : > { %v409_v46 = vpop.f32.mrf.mxu2 }
  0xbe   : > { %v410_v47 = vadd.f32 %v1276_v26, %v409_v46 }
  0xbf   : > { %v388_v48 = vpop.f32.mrf.mxu0 }
  0xc0   : > { %v435_v49 = vmax.f32 %v410_v47, 0.0  ;;  %v389_v50 = vadd.f32 %v1276_v26, %v388_v48 }
  0xc2   : > { %v428_v51 = vmax.f32 %v389_v50, 0.0  ;;  %1201 = vmatmul.msk.f32.gmra.mxu3 %vm447_vm2, %v435_v49 }
  0xc4   : > { %1194 = vmatmul.msk.f32.gmra.mxu1 %vm447_vm2, %v428_v51 }
  0xc5   : > { %v412_v52 = vpop.f32.mrf.mxu2 }
  0xc6   : > { %v413_v53 = vadd.f32 %v1276_v26, %v412_v52 }
  0xc7   : > { %v391_v54 = vpop.f32.mrf.mxu0 }
  0xc8   : > { %v436_v55 = vmax.f32 %v413_v53, 0.0  ;;  %v392_v56 = vadd.f32 %v1276_v26, %v391_v54 }
  0xca   : > { %v429_v57 = vmax.f32 %v392_v56, 0.0  ;;  %1202 = vmatmul.msk.f32.gmra.mxu3 %vm447_vm2, %v436_v55 }
  0xcc   : > { %1195 = vmatmul.msk.f32.gmra.mxu1 %vm447_vm2, %v429_v57 }
  0xcd   : > { %v415_v58 = vpop.f32.mrf.mxu2 }
  0xce   : > { %v416_v59 = vadd.f32 %v1276_v26, %v415_v58 }
  0xcf   : > { %v394_v60 = vpop.f32.mrf.mxu0 }
  0xd0   : > { %v437_v61 = vmax.f32 %v416_v59, 0.0  ;;  %v395_v62 = vadd.f32 %v1276_v26, %v394_v60 }
  0xd2   : > { %v430_v63 = vmax.f32 %v395_v62, 0.0  ;;  %1203 = vmatmul.msk.f32.gmra.mxu3 %vm447_vm2, %v437_v61 }
  0xd4   : > { %1196 = vmatmul.msk.f32.gmra.mxu1 %vm447_vm2, %v430_v63 }
  0xd5   : > { %v418_v0 = vpop.f32.mrf.mxu2 }
  0xd6   : > { %v419_v1 = vadd.f32 %v1276_v26, %v418_v0 }
  0xd7   : > { %v397_v2 = vpop.f32.mrf.mxu0 }
  0xd8   : > { %v438_v3 = vmax.f32 %v419_v1, 0.0  ;;  %v398_v4 = vadd.f32 %v1276_v26, %v397_v2 }
  0xda   : > { %v431_v5 = vmax.f32 %v398_v4, 0.0  ;;  %1204 = vmatmul.msk.f32.gmra.mxu3 %vm447_vm2, %v438_v3 }
  0xdc   : > { %1197 = vmatmul.msk.f32.gmra.mxu1 %vm447_vm2, %v431_v5 }
  0xdd   : > { %v421_v6 = vpop.f32.mrf.mxu2 }
  0xde   : > { %v422_v8 = vadd.f32 %v1276_v26, %v421_v6 }
  0xe0   : > { %v439_v9 = vmax.f32 %v422_v8, 0.0 }
  0xe2   : > { %1205 = vmatmul.msk.f32.gmra.mxu3 %vm447_vm2, %v439_v9 }
  0xe4   : > { %1198 = vmatmul.msk.f32.gmra.mxu1 %vm447_vm2, %v432_v10 }
 0x121   : > { %v513_v12 = vpop.f32.mrf.mxu1 }
 0x122   : > { %v514_v13 = vadd.f32 %v1587_v11, %v513_v12 }
 0x124   : > { %v561_v15 = vmax.f32 %v514_v13, 0.0 }
 0x126   : > { %v581_v16 = vmul.f32 %v1593_v14, %v561_v15 }
 0x128   : > { %v598_v17 = vsel %vm597_vm3, %v581_v16, 0.0 }
 0x129   : > { %v516_v18 = vpop.f32.mrf.mxu1  ;;  %599 = vadd.xlane.f32.xlu0 %v598_v17 }
 0x12a   : > { %v517_v19 = vadd.f32 %v1587_v11, %v516_v18 }
 0x12c   : > { %v562_v20 = vmax.f32 %v517_v19, 0.0 }
 0x12e   : > { %v582_v21 = vmul.f32 %v1593_v14, %v562_v20 }
 0x130   : > { %v601_v22 = vsel %vm597_vm3, %v582_v21, 0.0 }
 0x131   : > { %v519_v23 = vpop.f32.mrf.mxu1  ;;  %602 = vadd.xlane.f32.xlu0 %v601_v22 }
 0x132   : > { %v520_v24 = vadd.f32 %v1587_v11, %v519_v23 }
 0x134   : > { %v563_v25 = vmax.f32 %v520_v24, 0.0 }
 0x135   : > { %v540_v26 = vpop.f32.mrf.mxu3 }
 0x136   : > { %v541_v27 = vadd.f32 %v1587_v11, %v540_v26  ;;  %v583_v28 = vmul.f32 %v1593_v14, %v563_v25 }
 0x138   : > { %v570_v29 = vmax.f32 %v541_v27, 0.0  ;;  %v604_v30 = vsel %vm597_vm3, %v583_v28, 0.0 }
 0x139   : > { %v522_v31 = vpop.f32.mrf.mxu1  ;;  %605 = vadd.xlane.f32.xlu1 %v604_v30 }
 0x13a   : > { %v523_v32 = vadd.f32 %v1587_v11, %v522_v31  ;;  %v590_v33 = vmul.f32 %v1593_v14, %v570_v29  ;;  %v1642_v31 = vld [vmem:[#allocation2] ss:$0 sm:$0xff] }
 0x13c   : > { %v564_v34 = vmax.f32 %v523_v32, 0.0  ;;  %v625_v35 = vsel %vm597_vm3, %v590_v33, 0.0  ;;  %v1408_v32 = vmov 0  }
 0x13d   : > { %v543_v36 = vpop.f32.mrf.mxu3  ;;  %626 = vadd.xlane.f32.xlu0 %v625_v35  ;;  %1273 = vset.pattern.permute.xlu1 %v1408_v32 }
 0x13e   : > { %v544_v37 = vadd.f32 %v1587_v11, %v543_v36  ;;  %v584_v38 = vmul.f32 %v1593_v14, %v564_v34  ;;  %1274 = vset.pattern.permute.xlu2 %v1408_v32  ;;  %1275 = vset.pattern.permute.xlu0 %v1408_v32 }
 0x140   : > { %v571_v39 = vmax.f32 %v544_v37, 0.0  ;;  %v607_v40 = vsel %vm597_vm3, %v584_v38, 0.0 }
 0x141   : > { %v525_v41 = vpop.f32.mrf.mxu1  ;;  %608 = vadd.xlane.f32.xlu1 %v607_v40 }
 0x142   : > { %v526_v42 = vadd.f32 %v1587_v11, %v525_v41  ;;  %v591_v44 = vmul.f32 %v1593_v14, %v571_v39 }
 0x144   : > { %v565_v43 = vmax.f32 %v526_v42, 0.0  ;;  %v628_v50 = vsel %vm597_vm3, %v591_v44, 0.0 }
 0x145   : > { %v546_v45 = vpop.f32.mrf.mxu3 }
 0x146   : > { %v547_v46 = vadd.f32 %v1587_v11, %v546_v45  ;;  %v585_v47 = vmul.f32 %v1593_v14, %v565_v43 }
 0x148   : > { %v572_v48 = vmax.f32 %v547_v46, 0.0  ;;  %v610_v49 = vsel %vm597_vm3, %v585_v47, 0.0 }
 0x149   : > { %v528_v51 = vpop.f32.mrf.mxu1  ;;  %611 = vadd.xlane.f32.xlu2 %v610_v49  ;;  %629 = vadd.xlane.f32.xlu1 %v628_v50 }
 0x14a   : > { %v529_v52 = vadd.f32 %v1587_v11, %v528_v51  ;;  %v592_v53 = vmul.f32 %v1593_v14, %v572_v48 }
 0x14c   : > { %v566_v55 = vmax.f32 %v529_v52, 0.0  ;;  %v631_v56 = vsel %vm597_vm3, %v592_v53, 0.0 }
 0x14d   : > { %v549_v54 = vpop.f32.mrf.mxu3 }
 0x14e   : > { %v550_v59 = vadd.f32 %v1587_v11, %v549_v54  ;;  %v586_v61 = vmul.f32 %v1593_v14, %v566_v55 }
 0x150   : > { %v573_v1 = vmax.f32 %v550_v59, 0.0  ;;  %v613_v3 = vsel %vm597_vm3, %v586_v61, 0.0 }
 0x151   : > { %v531_v57 = vpop.f32.mrf.mxu1  ;;  %632 = vadd.xlane.f32.xlu2 %v631_v56 }
 0x152   : > { %v532_v58 = vadd.f32 %v1587_v11, %v531_v57  ;;  %v593_v10 = vmul.f32 %v1593_v14, %v573_v1 }
 0x154   : > { %v567_v60 = vmax.f32 %v532_v58, 0.0  ;;  %v634_v17 = vsel %vm597_vm3, %v593_v10, 0.0 }
 0x155   : > { %v552_v62 = vpop.f32.mrf.mxu3 }
 0x156   : > { %v553_v63 = vadd.f32 %v1587_v11, %v552_v62  ;;  %v587_v0 = vmul.f32 %v1593_v14, %v567_v60 }
 0x158   : > { %v574_v2 = vmax.f32 %v553_v63, 0.0  ;;  %v616_v4 = vsel %vm597_vm3, %v587_v0, 0.0 }
 0x159   : > { %v534_v5 = vpop.f32.mrf.mxu1  ;;  %614 = vadd.xlane.f32.xlu2 %v613_v3  ;;  %617 = vadd.xlane.f32.xlu0 %v616_v4 }
 0x15a   : > { %v535_v6 = vadd.f32 %v1587_v11, %v534_v5  ;;  %v594_v7 = vmul.f32 %v1593_v14, %v574_v2 }
 0x15c   : > { %v568_v8 = vmax.f32 %v535_v6, 0.0  ;;  %v637_v9 = vsel %vm597_vm3, %v594_v7, 0.0 }
 0x15d   : > { %v555_v12 = vpop.f32.mrf.mxu3  ;;  %638 = vadd.xlane.f32.xlu1 %v637_v9 }
 0x15e   : > { %v556_v13 = vadd.f32 %v1587_v11, %v555_v12  ;;  %v588_v15 = vmul.f32 %v1593_v14, %v568_v8 }
 0x160   : > { %v575_v16 = vmax.f32 %v556_v13, 0.0  ;;  %v619_v21 = vsel %vm597_vm3, %v588_v15, 0.0 }
 0x161   : > { %v537_v18 = vpop.f32.mrf.mxu1  ;;  %635 = vadd.xlane.f32.xlu0 %v634_v17 }
 0x162   : > { %v538_v19 = vadd.f32 %v1587_v11, %v537_v18  ;;  %v595_v20 = vmul.f32 %v1593_v14, %v575_v16 }
 0x164   : > { %v569_v22 = vmax.f32 %v538_v19, 0.0  ;;  %v640_v23 = vsel %vm597_vm3, %v595_v20, 0.0 }
 0x165   : > { %v558_v24 = vpop.f32.mrf.mxu3  ;;  %641 = vadd.xlane.f32.xlu2 %v640_v23  ;;  %620 = vadd.xlane.f32.xlu1 %v619_v21 }
 0x166   : > { %v559_v25 = vadd.f32 %v1587_v11, %v558_v24  ;;  %v589_v27 = vmul.f32 %v1593_v14, %v569_v22 }
 0x168   : > { %v576_v26 = vmax.f32 %v559_v25, 0.0  ;;  %v622_v29 = vsel %vm597_vm3, %v589_v27, 0.0 }
 0x16a   : > { %v596_v28 = vmul.f32 %v1593_v14, %v576_v26 }
 0x16c   : > { %v643_v30 = vsel %vm597_vm3, %v596_v28, 0.0 }
 0x16d   : > { %623 = vadd.xlane.f32.xlu2 %v622_v29  ;;  %644 = vadd.xlane.f32.xlu0 %v643_v30 }
 0x19c   : > { %v600_v33 = vpop.xlane.xlu0 %599 }
 0x19d   : > { %v650_v11 = vadd.f32 %v1642_v31, %v600_v33 }
 0x19f   : > { %v1206_v34 = vmul.f32 -1.442695, %v650_v11 }
 0x1a1   : > { %1280 = vpow2.f32 %v1206_v34 }
 0x1a4   : > { %v603_v35 = vpop.xlane.xlu0 %602 }
 0x1a5   : > { %v651_v14 = vadd.f32 %v1642_v31, %v603_v35 }
 0x1a7   : > { %v1281_v36 = vpop.eup %1280  ;;  %v1207_v37 = vmul.f32 -1.442695, %v651_v14 }
 0x1a8   : > { %v714_v38 = vadd.f32 1.0, %v1281_v36 }
 0x1a9   : > { %1282 = vpow2.f32 %v1207_v37 }
 0x1aa   : > { %1284 = vrcp.f32 %v714_v38  ;;  %v739_v51 = vand.u32 2147483647, %v714_v38  ;;  %v741_v52 = vand.u32 2147483648, %v714_v38  ;;  %vm735_vm5 = vweird.f32 %v714_v38 }
 0x1ac   : > { %v606_v39 = vpop.xlane.xlu1 %605  ;;  %v742_v60 = vor.u32 1.1754944e-38, %v741_v52  ;;  %vm740_vm7 = vcmp.eq.f32.partialorder %v739_v51, 8.507059e+37 }
 0x1ad   : > { %v652_v40 = vadd.f32 %v1642_v31, %v606_v39 }
 0x1af   : > { %v1283_v41 = vpop.eup %1282  ;;  %v1208_v42 = vmul.f32 -1.442695, %v652_v40 }
 0x1b0   : > { %v1285_v43 = vpop.eup %1284  ;;  %v715_v44 = vadd.f32 1.0, %v1283_v41  ;;  %v627_v45 = vpop.xlane.xlu0 %626 }
 0x1b1   : > { %1286 = vpow2.f32 %v1208_v42  ;;  %v659_v46 = vadd.f32 %v1642_v31, %v627_v45  ;;  %v731_v47 = vmul.f32 %v1285_v43, %v714_v38  ;;  %vm736_vm4 = vweird.f32 %v1285_v43 }
 0x1b2   : > { %1288 = vrcp.f32 %v715_v44  ;;  %vm737_vm6 = vmor %vm735_vm5, %vm736_vm4  ;;  %v754_v5 = vand.u32 2147483647, %v715_v44  ;;  %v756_v6 = vand.u32 2147483648, %v715_v44  ;;  %vm750_vm9 = vweird.f32 %v715_v44 }
 0x1b3   : > { %v1215_v48 = vmul.f32 -1.442695, %v659_v46  ;;  %v732_v49 = vsub.f32 1.0, %v731_v47 }
 0x1b4   : > { %v609_v50 = vpop.xlane.xlu1 %608  ;;  %v757_v18 = vor.u32 1.1754944e-38, %v756_v6  ;;  %vm755_vm11 = vcmp.eq.f32.partialorder %v754_v5, 8.507059e+37 }
 0x1b5   : > { %1290 = vpow2.f32 %v1215_v48  ;;  %v653_v53 = vadd.f32 %v1642_v31, %v609_v50  ;;  %v733_v54 = vmul.f32 %v1285_v43, %v732_v49 }
 0x1b7   : > { %v1287_v55 = vpop.eup %1286  ;;  %v1209_v56 = vmul.f32 -1.442695, %v653_v53  ;;  %v734_v57 = vadd.f32 %v1285_v43, %v733_v54 }
 0x1b8   : > { %v1289_v58 = vpop.eup %1288  ;;  %v716_v59 = vadd.f32 1.0, %v1287_v55 }
 0x1b9   : > { %1292 = vpow2.f32 %v1209_v56  ;;  %v738_v61 = vsel %vm737_vm6, %v1285_v43, %v734_v57  ;;  %v746_v62 = vmul.f32 %v1289_v58, %v715_v44  ;;  %vm751_vm8 = vweird.f32 %v1289_v58 }
 0x1ba   : > { %1294 = vrcp.f32 %v716_v59  ;;  %v743_v63 = vsel %vm740_vm7, %v742_v60, %v738_v61  ;;  %vm752_vm10 = vmor %vm750_vm9, %vm751_vm8  ;;  %v769_v25 = vand.u32 2147483647, %v716_v59  ;;  %v771_v26 = vand.u32 2147483648, %v716_v59 }
 0x1bb   : > { %v1291_v0 = vpop.eup %1290  ;;  %987 = vperm.xlu1 %1273, %v743_v63   ;;  %v747_v1 = vsub.f32 1.0, %v746_v62  ;;  %vm765_vm13 = vweird.f32 %v716_v59 }
 0x1bc   : > { %v1649_v2 = vadd.f32 1.0, %v1291_v0  ;;  %v612_v3 = vpop.xlane.xlu2 %611  ;;  %v630_v4 = vpop.xlane.xlu1 %629  ;;  %vm770_vm15 = vcmp.eq.f32.partialorder %v769_v25, 8.507059e+37  ;;  %v772_v14 = vor.u32 1.1754944e-38, %v771_v26 }
 0x1bd   : > { %v654_v7 = vadd.f32 %v1642_v31, %v612_v3  ;;  %v660_v8 = vadd.f32 %v1642_v31, %v630_v4  ;;  %v748_v9 = vmul.f32 %v1289_v58, %v747_v1 }
 0x1be   : > { %1296 = vrcp.f32 %v1649_v2  ;;  %v874_v39 = vand.u32 2147483647, %v1649_v2  ;;  %vm870_vm0 = vweird.f32 %v1649_v2  ;;  %v876_v44 = vand.u32 2147483648, %v1649_v2 }
 0x1bf   : > { %v1293_v10 = vpop.eup %1292  ;;  %v1210_v12 = vmul.f32 -1.442695, %v654_v7  ;;  %v1216_v13 = vmul.f32 -1.442695, %v660_v8  ;;  %v749_v15 = vadd.f32 %v1289_v58, %v748_v9 }
 0x1c0   : > { %v1295_v16 = vpop.eup %1294  ;;  %v1654_v17 = vadd.f32 1.0, %v1293_v10  ;;  %vm1684_vm5 = vcmp.eq.f32.partialorder %v874_v39, 8.507059e+37  ;;  %v877_v0 = vor.u32 1.1754944e-38, %v876_v44 }
 0x1c1   : > { %1298 = vpow2.f32 %v1210_v12  ;;  %v753_v19 = vsel %vm752_vm10, %v1289_v58, %v749_v15  ;;  %v761_v20 = vmul.f32 %v1295_v16, %v716_v59  ;;  %vm766_vm12 = vweird.f32 %v1295_v16 }
 0x1c2   : > { %1300 = vrcp.f32 %v1654_v17  ;;  %v758_v21 = vsel %vm755_vm11, %v757_v18, %v753_v19  ;;  %vm767_vm14 = vmor %vm765_vm13, %vm766_vm12  ;;  %v784_v47 = vand.u32 2147483647, %v1654_v17  ;;  %v786_v48 = vand.u32 2147483648, %v1654_v17 }
 0x1c3   : > { %1302 = vpow2.f32 %v1216_v13  ;;  %990 = vperm.xlu2 %1274, %v758_v21   ;;  %v762_v22 = vsub.f32 1.0, %v761_v20  ;;  %vm780_vm3 = vweird.f32 %v1654_v17 }
 0x1c4   : > { %v1657_v23 = vpop.eup %1296  ;;  %v633_v24 = vpop.xlane.xlu2 %632  ;;  %vm785_vm7 = vcmp.eq.f32.partialorder %v784_v47, 8.507059e+37  ;;  %v787_v63 = vor.u32 1.1754944e-38, %v786_v48 }
 0x1c5   : > { %v661_v27 = vadd.f32 %v1642_v31, %v633_v24  ;;  %v763_v28 = vmul.f32 %v1295_v16, %v762_v22  ;;  %v866_v29 = vmul.f32 %v1657_v23, %v1649_v2  ;;  %vm871_vm1 = vweird.f32 %v1657_v23 }
 0x1c6   : > { %vm1680_vm4 = vmor %vm870_vm0, %vm871_vm1 }
 0x1c7   : > { %v1299_v30 = vpop.eup %1298  ;;  %v1217_v32 = vmul.f32 -1.442695, %v661_v27  ;;  %v764_v33 = vadd.f32 %v1295_v16, %v763_v28  ;;  %v867_v11 = vsub.f32 1.0, %v866_v29 }
 0x1c8   : > { %v1301_v34 = vpop.eup %1300  ;;  %v1662_v35 = vadd.f32 1.0, %v1299_v30 }
 0x1c9   : > { %v1303_v36 = vpop.eup %1302  ;;  %1304 = vpow2.f32 %v1217_v32  ;;  %v768_v37 = vsel %vm767_vm14, %v1295_v16, %v764_v33  ;;  %v776_v38 = vmul.f32 %v1301_v34, %v1654_v17  ;;  %v868_v42 = vmul.f32 %v1657_v23, %v867_v11 }
 0x1ca   : > { %1306 = vrcp.f32 %v1662_v35  ;;  %v1667_v40 = vadd.f32 1.0, %v1303_v36  ;;  %v773_v41 = vsel %vm770_vm15, %v772_v14, %v768_v37  ;;  %vm781_vm2 = vweird.f32 %v1301_v34 }
 0x1cb   : > { %993 = vperm.xlu0 %1275, %v773_v41   ;;  %v777_v43 = vsub.f32 1.0, %v776_v38  ;;  %v869_v49 = vadd.f32 %v1657_v23, %v868_v42  ;;  %vm782_vm6 = vmor %vm780_vm3, %vm781_vm2  ;;  %v799_v12 = vand.u32 2147483647, %v1662_v35  ;;  %v801_v13 = vand.u32 2147483648, %v1662_v35 }
 0x1cc   : > { %1308 = vrcp.f32 %v1667_v40  ;;  %v615_v45 = vpop.xlane.xlu2 %614  ;;  %v618_v46 = vpop.xlane.xlu0 %617  ;;  %vm795_vm9 = vweird.f32 %v1662_v35  ;;  %vm885_vm10 = vweird.f32 %v1667_v40  ;;  %v889_v18 = vand.u32 2147483647, %v1667_v40 }
 0x1cd   : > { %v655_v50 = vadd.f32 %v1642_v31, %v615_v45  ;;  %v656_v51 = vadd.f32 %v1642_v31, %v618_v46  ;;  %v778_v52 = vmul.f32 %v1301_v34, %v777_v43  ;;  %v873_v59 = vsel %vm1680_vm4, %v1657_v23, %v869_v49 }
 0x1ce   : > { %v878_v6 = vsel %vm1684_vm5, %v877_v0, %v873_v59  ;;  %v891_v23 = vand.u32 2147483648, %v1667_v40  ;;  %vm800_vm12 = vcmp.eq.f32.partialorder %v799_v12, 8.507059e+37  ;;  %v802_v28 = vor.u32 1.1754944e-38, %v801_v13 }
 0x1cf   : > { %v1305_v55 = vpop.eup %1304  ;;  %v1211_v56 = vmul.f32 -1.442695, %v655_v50  ;;  %v1212_v57 = vmul.f32 -1.442695, %v656_v51  ;;  %v779_v58 = vadd.f32 %v1301_v34, %v778_v52  ;;  %vm890_vm15 = vcmp.eq.f32.partialorder %v889_v18, 8.507059e+37 }
 0x1d0   : > { %v1307_v60 = vpop.eup %1306  ;;  %v1691_v61 = vadd.f32 1.0, %v1305_v55  ;;  %v639_v62 = vpop.xlane.xlu1 %638  ;;  %v892_v38 = vor.u32 1.1754944e-38, %v891_v23 }
 0x1d1   : > { %1310 = vpow2.f32 %v1211_v56  ;;  %v663_v1 = vadd.f32 %v1642_v31, %v639_v62  ;;  %v783_v2 = vsel %vm782_vm6, %v1301_v34, %v779_v58  ;;  %v791_v3 = vmul.f32 %v1307_v60, %v1662_v35 }
 0x1d2   : > { %v1309_v4 = vpop.eup %1308  ;;  %1312 = vrcp.f32 %v1691_v61  ;;  %v788_v5 = vsel %vm785_vm7, %v787_v63, %v783_v2  ;;  %vm796_vm8 = vweird.f32 %v1307_v60  ;;  %v904_v45 = vand.u32 2147483647, %v1691_v61 }
 0x1d3   : > { %1314 = vpow2.f32 %v1212_v57  ;;  %v1219_v7 = vmul.f32 -1.442695, %v663_v1  ;;  %996 = vperm.xlu2 %1274, %v788_v5   ;;  %1014 = vperm.xlu0 %1275, %v878_v6   ;;  %v792_v8 = vsub.f32 1.0, %v791_v3  ;;  %v881_v9 = vmul.f32 %v1309_v4, %v1667_v40  ;;  %vm797_vm11 = vmor %vm795_vm9, %vm796_vm8 }
 0x1d4   : > { %v636_v10 = vpop.xlane.xlu0 %635  ;;  %vm886_vm13 = vweird.f32 %v1309_v4  ;;  %v906_v46 = vand.u32 2147483648, %v1691_v61  ;;  %vm900_vm1 = vweird.f32 %v1691_v61  ;;  %vm905_vm3 = vcmp.eq.f32.partialorder %v904_v45, 8.507059e+37 }
 0x1d5   : > { %1316 = vpow2.f32 %v1219_v7  ;;  %v662_v15 = vadd.f32 %v1642_v31, %v636_v10  ;;  %v793_v16 = vmul.f32 %v1307_v60, %v792_v8  ;;  %v882_v17 = vsub.f32 1.0, %v881_v9  ;;  %vm887_vm14 = vmor %vm885_vm10, %vm886_vm13 }
 0x1d6   : > { %v907_v57 = vor.u32 1.1754944e-38, %v906_v46 }
 0x1d7   : > { %v1311_v19 = vpop.eup %1310  ;;  %v1218_v20 = vmul.f32 -1.442695, %v662_v15  ;;  %v794_v21 = vadd.f32 %v1307_v60, %v793_v16  ;;  %v883_v22 = vmul.f32 %v1309_v4, %v882_v17 }
 0x1d8   : > { %v1313_v24 = vpop.eup %1312  ;;  %v1706_v25 = vadd.f32 1.0, %v1311_v19  ;;  %v642_v26 = vpop.xlane.xlu2 %641 }
 0x1d9   : > { %v621_v27 = vpop.xlane.xlu1 %620  ;;  %v1315_v29 = vpop.eup %1314  ;;  %1318 = vpow2.f32 %v1218_v20  ;;  %v664_v30 = vadd.f32 %v1642_v31, %v642_v26  ;;  %v798_v33 = vsel %vm797_vm11, %v1307_v60, %v794_v21  ;;  %v884_v35 = vadd.f32 %v1309_v4, %v883_v22 }
 0x1da   : > { %v657_v32 = vadd.f32 %v1642_v31, %v621_v27  ;;  %1320 = vrcp.f32 %v1706_v25  ;;  %v1712_v11 = vadd.f32 1.0, %v1315_v29  ;;  %v803_v34 = vsel %vm800_vm12, %v802_v28, %v798_v33 }
 0x1db   : > { %v1317_v14 = vpop.eup %1316  ;;  %v1220_v36 = vmul.f32 -1.442695, %v664_v30  ;;  %999 = vperm.xlu1 %1273, %v803_v34   ;;  %v896_v39 = vmul.f32 %v1313_v24, %v1691_v61  ;;  %v888_v42 = vsel %vm887_vm14, %v1309_v4, %v884_v35  ;;  %vm901_vm0 = vweird.f32 %v1313_v24 }
 0x1dc   : > { %v1213_v37 = vmul.f32 -1.442695, %v657_v32  ;;  %1322 = vrcp.f32 %v1712_v11  ;;  %v1718_v41 = vadd.f32 1.0, %v1317_v14  ;;  %v893_v43 = vsel %vm890_vm15, %v892_v38, %v888_v42  ;;  %vm902_vm2 = vmor %vm900_vm1, %vm901_vm0 }
 0x1dd   : > { %1324 = vpow2.f32 %v1220_v36  ;;  %v897_v44 = vsub.f32 1.0, %v896_v39  ;;  %1017 = vperm.xlu2 %1274, %v893_v43   ;;  %v816_v61 = vand.u32 2147483648, %v1706_v25  ;;  %v814_v3 = vand.u32 2147483647, %v1706_v25 }
 0x1de   : > { %1326 = vpow2.f32 %v1213_v37  ;;  %vm810_vm5 = vweird.f32 %v1706_v25  ;;  %v829_v9 = vand.u32 2147483647, %v1712_v11  ;;  %v831_v10 = vand.u32 2147483648, %v1712_v11 }
 0x1df   : > { %v1319_v47 = vpop.eup %1318  ;;  %v898_v40 = vmul.f32 %v1313_v24, %v897_v44  ;;  %1328 = vrcp.f32 %v1718_v41  ;;  %v817_v13 = vor.u32 1.1754944e-38, %v816_v61  ;;  %vm815_vm8 = vcmp.eq.f32.partialorder %v814_v3, 8.507059e+37 }
 0x1e0   : > { %v1321_v48 = vpop.eup %1320  ;;  %v1723_v49 = vadd.f32 1.0, %v1319_v47  ;;  %v624_v50 = vpop.xlane.xlu2 %623  ;;  %vm825_vm9 = vweird.f32 %v1712_v11  ;;  %vm830_vm11 = vcmp.eq.f32.partialorder %v829_v9, 8.507059e+37  ;;  %v832_v21 = vor.u32 1.1754944e-38, %v831_v10 }
 0x1e1   : > { %v645_v51 = vpop.xlane.xlu0 %644  ;;  %v658_v52 = vadd.f32 %v1642_v31, %v624_v50  ;;  %v899_v54 = vadd.f32 %v1313_v24, %v898_v40  ;;  %v806_v55 = vmul.f32 %v1321_v48, %v1706_v25  ;;  %vm811_vm4 = vweird.f32 %v1321_v48 }
 0x1e2   : > { %v665_v53 = vadd.f32 %v1642_v31, %v645_v51  ;;  %v1323_v56 = vpop.eup %1322  ;;  %1330 = vrcp.f32 %v1723_v49  ;;  %vm812_vm6 = vmor %vm810_vm5, %vm811_vm4  ;;  %v921_v25 = vand.u32 2147483648, %v1723_v49  ;;  %v919_v30 = vand.u32 2147483647, %v1723_v49 }
 0x1e3   : > { %v1325_v58 = vpop.eup %1324  ;;  %v1214_v59 = vmul.f32 -1.442695, %v658_v52  ;;  %v903_v62 = vsel %vm902_vm2, %v1313_v24, %v899_v54  ;;  %v807_v63 = vsub.f32 1.0, %v806_v55  ;;  %v821_v1 = vmul.f32 %v1323_v56, %v1712_v11 }
 0x1e4   : > { %v1221_v60 = vmul.f32 -1.442695, %v665_v53  ;;  %v908_v0 = vsel %vm905_vm3, %v907_v57, %v903_v62  ;;  %v1327_v31 = vpop.eup %1326  ;;  %v1735_v5 = vadd.f32 1.0, %v1325_v58  ;;  %vm826_vm7 = vweird.f32 %v1323_v56 }
 0x1e5   : > { %1332 = vpow2.f32 %v1214_v59  ;;  %1020 = vperm.xlu1 %1273, %v908_v0   ;;  %v808_v2 = vmul.f32 %v1321_v48, %v807_v63  ;;  %v1733_v4 = vpop.eup %1328  ;;  %v1737_v6 = vadd.f32 1.0, %v1327_v31  ;;  %v822_v7 = vsub.f32 1.0, %v821_v1  ;;  %vm827_vm10 = vmor %vm825_vm9, %vm826_vm7 }
 0x1e6   : > { %1334 = vpow2.f32 %v1221_v60  ;;  %v926_v26 = vmul.f32 %v1733_v4, %v1718_v41  ;;  %vm915_vm13 = vweird.f32 %v1723_v49  ;;  %v922_v14 = vor.u32 1.1754944e-38, %v921_v25 }
 0x1e7   : > { %v809_v8 = vadd.f32 %v1321_v48, %v808_v2  ;;  %1336 = vrcp.f32 %v1737_v6  ;;  %v823_v15 = vmul.f32 %v1323_v56, %v822_v7  ;;  %vm920_vm15 = vcmp.eq.f32.partialorder %v919_v30, 8.507059e+37 }
 0x1e8   : > { %v1331_v12 = vpop.eup %1330  ;;  %1338 = vrcp.f32 %v1735_v5  ;;  %v927_v36 = vsub.f32 1.0, %v926_v26  ;;  %v844_v42 = vand.u32 2147483647, %v1737_v6  ;;  %v846_v43 = vand.u32 2147483648, %v1737_v6 }
 0x1e9   : > { %v813_v16 = vsel %vm812_vm6, %v1321_v48, %v809_v8  ;;  %v911_v17 = vmul.f32 %v1331_v12, %v1723_v49  ;;  %v824_v19 = vadd.f32 %v1323_v56, %v823_v15  ;;  %vm916_vm12 = vweird.f32 %v1331_v12 }
 0x1ea   : > { %v818_v18 = vsel %vm815_vm8, %v817_v13, %v813_v16  ;;  %vm917_vm14 = vmor %vm915_vm13, %vm916_vm12  ;;  %v928_v47 = vmul.f32 %v1733_v4, %v927_v36  ;;  %vm840_vm1 = vweird.f32 %v1737_v6  ;;  %vm930_vm2 = vweird.f32 %v1718_v41 }
 0x1eb   : > { %v1333_v20 = vpop.eup %1332  ;;  %1002 = vperm.xlu2 %1274, %v818_v18   ;;  %v912_v22 = vsub.f32 1.0, %v911_v17  ;;  %v828_v24 = vsel %vm827_vm10, %v1323_v56, %v824_v19  ;;  %vm845_vm4 = vcmp.eq.f32.partialorder %v844_v42, 8.507059e+37  ;;  %v847_v50 = vor.u32 1.1754944e-38, %v846_v43 }
 0x1ec   : > { %v1746_v23 = vadd.f32 1.0, %v1333_v20  ;;  %v1335_v27 = vpop.eup %1334  ;;  %v833_v28 = vsel %vm830_vm11, %v832_v21, %v828_v24  ;;  %vm931_vm5 = vweird.f32 %v1733_v4  ;;  %v934_v51 = vand.u32 2147483647, %v1718_v41 }
 0x1ed   : > { %v913_v29 = vmul.f32 %v1331_v12, %v912_v22  ;;  %v1337_v32 = vpop.eup %1336  ;;  %v1753_v33 = vadd.f32 1.0, %v1335_v27  ;;  %1005 = vperm.xlu1 %1273, %v833_v28   ;;  %v929_v57 = vadd.f32 %v1733_v4, %v928_v47  ;;  %v936_v58 = vand.u32 2147483648, %v1718_v41  ;;  %vm1783_vm9 = vmor %vm930_vm2, %vm931_vm5 }
 0x1ee   : > { %1340 = vrcp.f32 %v1746_v23  ;;  %v836_v34 = vmul.f32 %v1337_v32, %v1737_v6  ;;  %v1757_v35 = vpop.eup %1338  ;;  %vm841_vm0 = vweird.f32 %v1337_v32  ;;  %v861_v59 = vand.u32 2147483648, %v1746_v23 }
 0x1ef   : > { %v914_v11 = vadd.f32 %v1331_v12, %v913_v29  ;;  %1342 = vrcp.f32 %v1753_v33  ;;  %v941_v45 = vmul.f32 %v1757_v35, %v1735_v5  ;;  %vm842_vm3 = vmor %vm840_vm1, %vm841_vm0  ;;  %v859_v62 = vand.u32 2147483647, %v1746_v23 }
 0x1f0   : > { %v837_v38 = vsub.f32 1.0, %v836_v34  ;;  %vm855_vm7 = vweird.f32 %v1746_v23  ;;  %vm960_vm8 = vweird.f32 %v1753_v33  ;;  %v964_v0 = vand.u32 2147483647, %v1753_v33 }
 0x1f1   : > { %v918_v37 = vsel %vm917_vm14, %v1331_v12, %v914_v11  ;;  %v942_v55 = vsub.f32 1.0, %v941_v45  ;;  %v966_v61 = vand.u32 2147483648, %v1753_v33  ;;  %v862_v6 = vor.u32 1.1754944e-38, %v861_v59 }
 0x1f2   : > { %v923_v39 = vsel %vm920_vm15, %v922_v14, %v918_v37  ;;  %v838_v44 = vmul.f32 %v1337_v32, %v837_v38  ;;  %v933_v7 = vsel %vm1783_vm9, %v1733_v4, %v929_v57  ;;  %vm860_vm12 = vcmp.eq.f32.partialorder %v859_v62, 8.507059e+37 }
 0x1f3   : > { %1023 = vperm.xlu0 %1275, %v923_v39   ;;  %v943_v3 = vmul.f32 %v1757_v35, %v942_v55  ;;  %vm935_vm13 = vcmp.eq.f32.partialorder %v934_v51, 8.507059e+37  ;;  %v937_v41 = vor.u32 1.1754944e-38, %v936_v58  ;;  %v967_v12 = vor.u32 1.1754944e-38, %v966_v61 }
 0x1f4   : > { %v1341_v46 = vpop.eup %1340  ;;  %v839_v40 = vadd.f32 %v1337_v32, %v838_v44  ;;  %vm965_vm15 = vcmp.eq.f32.partialorder %v964_v0, 8.507059e+37  ;;  %vm946_vm0 = vweird.f32 %v1757_v35  ;;  %v951_v4 = vand.u32 2147483648, %v1735_v5 }
 0x1f5   : > { %v851_v48 = vmul.f32 %v1341_v46, %v1746_v23  ;;  %v1343_v49 = vpop.eup %1342  ;;  %vm856_vm6 = vweird.f32 %v1341_v46  ;;  %v944_v15 = vadd.f32 %v1757_v35, %v943_v3  ;;  %v938_v16 = vsel %vm935_vm13, %v937_v41, %v933_v7 }
 0x1f6   : > { %v843_v52 = vsel %vm842_vm3, %v1337_v32, %v839_v40  ;;  %v956_v54 = vmul.f32 %v1343_v49, %v1753_v33  ;;  %vm961_vm10 = vweird.f32 %v1343_v49  ;;  %vm857_vm11 = vmor %vm855_vm7, %vm856_vm6  ;;  %vm945_vm1 = vweird.f32 %v1735_v5 }
 0x1f7   : > { %v852_v53 = vsub.f32 1.0, %v851_v48  ;;  %v848_v56 = vsel %vm845_vm4, %v847_v50, %v843_v52  ;;  %vm962_vm14 = vmor %vm960_vm8, %vm961_vm10  ;;  %v949_v18 = vand.u32 2147483647, %v1735_v5  ;;  %v952_v20 = vor.u32 1.1754944e-38, %v951_v4 }
 0x1f8   : > { %1008 = vperm.xlu2 %1274, %v848_v56   ;;  %v957_v63 = vsub.f32 1.0, %v956_v54  ;;  %vm947_vm2 = vmor %vm945_vm1, %vm946_vm0  ;;  %v1034_v26 = vlaneseq  ;;  %vm1039_vm4 = vcmask 130112   ;;  %vm1043_vm5 = vcmask 195712  }
 0x1f9   : > { %v853_v60 = vmul.f32 %v1341_v46, %v852_v53  ;;  %v948_v19 = vsel %vm947_vm2, %v1757_v35, %v944_v15  ;;  %vm950_vm3 = vcmp.eq.f32.partialorder %v949_v18, 8.507059e+37  ;;  %vm1047_vm6 = vcmask 261312  }
 0x1fa   : > { %v958_v2 = vmul.f32 %v1343_v49, %v957_v63  ;;  %v953_v21 = vsel %vm950_vm3, %v952_v20, %v948_v19  ;;  %v1035_v28 = vand.u32 127, %v1034_v26  ;;  %vm1051_vm7 = vcmask 326912  }
 0x1fb   : > { %v854_v31 = vadd.f32 %v1341_v46, %v853_v60  ;;  %vm1055_vm8 = vcmask 392512   ;;  %vm1059_vm9 = vcmask 458112   ;;  %vm1063_vm10 = vcmask 523712  }
 0x1fc   : > { %v959_v9 = vadd.f32 %v1343_v49, %v958_v2  ;;  %v1041_v32 = vadd.s32 4294967280, %v1035_v28  ;;  %v1037_v33 = vadd.s32 4294967288, %v1035_v28  ;;  %v1049_v35 = vadd.s32 4294967264, %v1035_v28 }
 0x1fd   : > { %v858_v8 = vsel %vm857_vm11, %v1341_v46, %v854_v31  ;;  %v1045_v36 = vadd.s32 4294967272, %v1035_v28  ;;  %v1057_v43 = vadd.s32 4294967248, %v1035_v28  ;;  %v1053_v45 = vadd.s32 4294967256, %v1035_v28 }
 0x1fe   : > { %v863_v10 = vsel %vm860_vm12, %v862_v6, %v858_v8  ;;  %v963_v13 = vsel %vm962_vm14, %v1343_v49, %v959_v9  ;;  %v1061_v51 = vadd.s32 4294967240, %v1035_v28  ;;  %v1065_v52 = vadd.s32 4294967232, %v1035_v28 }
 0x1ff   : > { %1011 = vperm.xlu1 %1273, %v863_v10   ;;  %v968_v17 = vsel %vm965_vm15, %v967_v12, %v963_v13  ;;  %v1069_v53 = vadd.s32 4294967224, %v1035_v28  ;;  %v1073_v55 = vadd.s32 4294967216, %v1035_v28  ;;  %v1077_v59 = vadd.s32 4294967208, %v1035_v28 }
 0x200   : > { %1026 = vperm.xlu2 %1274, %v938_v16   ;;  %1032 = vperm.xlu0 %1275, %v968_v17   ;;  %vm1067_vm11 = vcmask 589312   ;;  %v1081_v62 = vadd.s32 4294967200, %v1035_v28  ;;  %vm1071_vm12 = vcmask 654912   ;;  %vm1075_vm13 = vcmask 720512  }
 0x201   : > { %vm1079_vm14 = vcmask 786112   ;;  %v1085_v3 = vadd.s32 4294967192, %v1035_v28  ;;  %vm1083_vm15 = vcmask 851712   ;;  %v1089_v41 = vadd.s32 4294967184, %v1035_v28 }
 0x202   : > { %v1093_v10 = vadd.s32 4294967176, %v1035_v28  ;;  %vm1087_vm0 = vcmask 917312   ;;  %vm1091_vm1 = vcmask 982912   ;;  %vm1095_vm2 = vcmask 1048512  }
 0x207   : > { %1029 = vperm.xlu1 %1273, %v953_v21  }
 0x21d   : > { %v991_v22 = vpop.permute.xlu2 %990 }
 0x21e   : > { %v1038_v14 = vperm.slane %v991_v22, %v1037_v33 }
 0x22d   : > { %v988_v23 = vpop.permute.xlu1 %987  ;;  %v997_v24 = vpop.permute.xlu2 %996 }
 0x22e   : > { %v1036_v11 = vperm.slane %v988_v23, %v1035_v28  ;;  %v1046_v44 = vperm.slane %v997_v24, %v1045_v36 }
 0x230   : > { %v1040_v37 = vsel %vm1039_vm4, %v1038_v14, %v1036_v11 }
 0x237   : > { %v1018_v27 = vpop.permute.xlu2 %1017 }
 0x238   : > { %v1074_v1 = vperm.slane %v1018_v27, %v1073_v55 }
 0x23d   : > { %v994_v29 = vpop.permute.xlu0 %993 }
 0x23e   : > { %v1042_v5 = vperm.slane %v994_v29, %v1041_v32 }
 0x240   : > { %v1044_v38 = vsel %vm1043_vm5, %v1042_v5, %v1040_v37 }
 0x241   : > { %v1048_v47 = vsel %vm1047_vm6, %v1046_v44, %v1044_v38 }
 0x245   : > { %v1003_v34 = vpop.permute.xlu2 %1002  ;;  %v1015_v39 = vpop.permute.xlu0 %1014 }
 0x246   : > { %v1054_v50 = vperm.slane %v1003_v34, %v1053_v45  ;;  %v1070_v0 = vperm.slane %v1015_v39, %v1069_v53 }
 0x24d   : > { %v1000_v25 = vpop.permute.xlu1 %999 }
 0x24e   : > { %v1050_v42 = vperm.slane %v1000_v25, %v1049_v35 }
 0x250   : > { %v1052_v40 = vsel %vm1051_vm7, %v1050_v42, %v1048_v47 }
 0x251   : > { %v1056_v54 = vsel %vm1055_vm8, %v1054_v50, %v1052_v40 }
 0x252   : > { %v1009_v48 = vpop.permute.xlu2 %1008 }
 0x253   : > { %v1062_v58 = vperm.slane %v1009_v48, %v1061_v51 }
 0x257   : > { %v1021_v30 = vpop.permute.xlu1 %1020 }
 0x258   : > { %v1078_v2 = vperm.slane %v1021_v30, %v1077_v59 }
 0x25a   : > { %v1027_v7 = vpop.permute.xlu2 %1026 }
 0x25b   : > { %v1086_v16 = vperm.slane %v1027_v7, %v1085_v3 }
 0x25f   : > { %v1006_v46 = vpop.permute.xlu1 %1005 }
 0x260   : > { %v1058_v49 = vperm.slane %v1006_v46, %v1057_v43 }
 0x262   : > { %v1060_v56 = vsel %vm1059_vm9, %v1058_v49, %v1056_v54 }
 0x263   : > { %v1064_v61 = vsel %vm1063_vm10, %v1062_v58, %v1060_v56 }
 0x265   : > { %v1024_v57 = vpop.permute.xlu0 %1023 }
 0x266   : > { %v1082_v8 = vperm.slane %v1024_v57, %v1081_v62 }
 0x271   : > { %v1012_v60 = vpop.permute.xlu1 %1011 }
 0x272   : > { %v1066_v63 = vperm.slane %v1012_v60, %v1065_v52  ;;  %v1033_v13 = vpop.permute.xlu0 %1032 }
 0x273   : > { %v1094_v18 = vperm.slane %v1033_v13, %v1093_v10 }
 0x274   : > { %v1068_v31 = vsel %vm1067_vm11, %v1066_v63, %v1064_v61 }
 0x275   : > { %v1072_v6 = vsel %vm1071_vm12, %v1070_v0, %v1068_v31 }
 0x276   : > { %v1076_v9 = vsel %vm1075_vm13, %v1074_v1, %v1072_v6 }
 0x277   : > { %v1080_v12 = vsel %vm1079_vm14, %v1078_v2, %v1076_v9 }
 0x278   : > { %v1084_v15 = vsel %vm1083_vm15, %v1082_v8, %v1080_v12 }
 0x279   : > { %v1030_v17 = vpop.permute.xlu1 %1029  ;;  %v1088_v19 = vsel %vm1087_vm0, %v1086_v16, %v1084_v15 }
 0x27a   : > { %v1090_v4 = vperm.slane %v1030_v17, %v1089_v41 }
 0x27c   : > { %v1092_v20 = vsel %vm1091_vm1, %v1090_v4, %v1088_v19 }
 0x27d   : > { %v1096_v21 = vsel %vm1095_vm2, %v1094_v18, %v1092_v20 }
 0x27e   : > { %1098 = vst [vmem:[%s273_s17] sm:$0x1] %v1096_v21 }
 0x27f   : > { %1371 = shalt.err (!%p1368_p3)
}
 0x280   : > { %1233 = dma.vmem_to_hbm [thread:$0]  (%p1490_p5), %s1111_s18, 16, %s1113_s19, %s1100_s6  }
 0x281 PF: > { %p1239_p4 = scmp.ge.s32.totalorder %s1406_s29, 2  ;;  %s1124_s9 = sand.u32 1, %s1394_s26  }
 0x282   : > { %s1125_s10 = scalar_lea.sflag [#allocation4], %s1124_s9 }
 0x283   : > { %p1236_p7 = pnand %p1239_p4, %p1494_p6 }
 0x285   : > { %p1237_p8 = pneg %p1236_p7 }
 0x287   : > { %1389 = dma.done.wait (%p1237_p8), %s1125_s10, 16  }
 0x288   : > { %1391 = vsyncadd (%p1237_p8), %s1125_s10, 4294967280  ;;  %p19_p9 = scmp.ge.s32.totalorder %s1477_s8, 4   ;;  %s1851_s26 = smov %s1398_s27 }
 0x289   : > { %s1852_s27 = smov %s1402_s28  ;;  %s1853_s28 = smov %s1488_s11 }
 0x28a   : > { %s1854_s29 = smov %s1477_s8  ;;  %21 = sbr.rel (!%p19_p9) target bundleno = 6 (0x6), region = 83 }
 0x28f   :  { %1130 = vsyncpa [#allocation4], 1 }
 0x290   :  { %1132 = vsyncpa [#allocation4 + $0x1], 1 }

</bundles_post_ra>
